<compile_context>
chip_gen: v7x
topology: tpu7x:2x2x1
jax: 0.10.0
libtpu: 0.0.40
codegen_flags: <defaults>
</compile_context>

<pallas_src>
import functools

import jax
import jax.numpy as jnp
from jax import lax
from jax.experimental import pallas as pl
from jax.experimental.pallas import tpu as pltpu


def _onehot_gather_kernel(idx_ref, table_ref, o_ref, *, vocab_size):
    """One (tb, E) block of gathered embedding rows per grid step.

    idx_ref   : VMEM i32[tb, 1]   indices for this block (streamed)
    table_ref : VMEM  [V, E]      full embedding table (constant index_map -> resident)
    o_ref     : VMEM  [tb, E]     gathered rows for this block
    """
    idx = idx_ref[...]                                            # (tb, 1)
    tb = idx.shape[0]
    col = lax.broadcasted_iota(jnp.int32, (tb, vocab_size), 1)    # (tb, V)
    onehot = (col == idx).astype(table_ref.dtype)                 # exact 0.0 / 1.0
    o_ref[...] = jnp.dot(
        onehot, table_ref[...],
        preferred_element_type=jnp.float32,
        precision=lax.Precision.HIGHEST,                          # keep gather exact
    ).astype(o_ref.dtype)


def _sublane_multiple(dtype):
    # Minimum dense sublane tile: 8 rows for 32-bit, 16 for 16-bit, 32 for 8-bit.
    return max(8, 32 // jnp.dtype(dtype).itemsize)


def _pick_block_rows(T, sub, block_rows):
    """Pick tb: a multiple of `sub`, <= block_rows, dividing T when possible."""
    target = max(sub, (min(block_rows, max(T, sub)) // sub) * sub)
    if T % sub == 0:
        for cand in range(min(target, T), 0, -sub):
            if T % cand == 0:
                # If everything would land in a single block, split it in two
                # so both v7x TensorCores get work (harmless on v5e/v6e).
                if cand == T and T > sub and T % (2 * sub) == 0:
                    return T // 2
                return cand
    return target  # ragged T: pad + slice path


def same_radical_embedding(x, embedding_weight, *, block_rows=512):
    """x: integer indices (batch, *input_dim); embedding_weight: (V, E).

    Returns embedding_weight[x] with shape (batch, *input_dim, E), matching
    SameRadicalEmbedding.forward.
    """
    V, E = embedding_weight.shape
    lead_shape = x.shape
    emb_dtype = embedding_weight.dtype
    itemsize = jnp.dtype(emb_dtype).itemsize

    idx_flat = x.reshape(-1).astype(jnp.int32)
    T = idx_flat.shape[0]
    if T == 0:
        return jnp.zeros((*lead_shape, E), dtype=emb_dtype)

    sub = _sublane_multiple(emb_dtype)
    tb = _pick_block_rows(T, sub, block_rows)
    num_blocks = pl.cdiv(T, tb)
    T_pad = num_blocks * tb

    idx2d = idx_flat.reshape(T, 1)
    if T_pad != T:
        # Padded indices gather nothing harmful (row 0); sliced off below.
        idx2d = jnp.pad(idx2d, ((0, T_pad - T), (0, 0)))

    # VMEM budget: resident table (double-buffered by default) + pipelined
    # index/output blocks + in-kernel one-hot scratch + slack.  Raised above
    # the 16/32 MiB default scoped limits on v5e/v6e.
    needed = (2 * V * E * itemsize          # table (default double-buffering)
              + 2 * tb * E * itemsize       # output blocks
              + 2 * tb * 4                  # index blocks
              + 2 * tb * V * 4              # one-hot intermediate
              + (4 << 20))                  # slack
    vmem_limit = int(min(max(needed, 32 << 20), 128 << 20))

    bytes_accessed = int(T_pad * 4 + V * E * itemsize + T_pad * E * itemsize)
    cost = pl.CostEstimate(flops=2 * T_pad * V * E,
                           transcendentals=0,
                           bytes_accessed=bytes_accessed)

    out = pl.pallas_call(
        functools.partial(_onehot_gather_kernel, vocab_size=V),
        out_shape=jax.ShapeDtypeStruct((T_pad, E), emb_dtype),
        grid_spec=pltpu.PrefetchScalarGridSpec(
            num_scalar_prefetch=0,
            grid=(num_blocks,),
            in_specs=[
                # Per-step index block, streamed/pipelined by BlockSpec.
                pl.BlockSpec((tb, 1), lambda i: (i, 0)),
                # Full table; constant index_map => fetched once, stays resident.
                pl.BlockSpec((V, E), lambda i: (0, 0)),
            ],
            out_specs=pl.BlockSpec((tb, E), lambda i: (i, 0)),
        ),
        compiler_params=pltpu.CompilerParams(
            dimension_semantics=("parallel",),
            vmem_limit_bytes=vmem_limit),
        cost_estimate=cost,
    )(idx2d, embedding_weight)

    if T_pad != T:
        out = out[:T]
    return out.reshape(*lead_shape, E)


def _reference(x, embedding_weight):
    """Pure-JAX reference matching the PyTorch forward."""
    return jnp.take(embedding_weight, x, axis=0)


if __name__ == "__main__":
    key = jax.random.PRNGKey(0)
    k_idx, k_emb = jax.random.split(key)

    batch = 2
    input_dim = (8, 4)        # forward does x.view(-1, input_dim[-1])
    embedding_dim = 128       # lane-dense (multiple of 128) output rows
    vocab_size = 64

    x = jax.random.randint(k_idx, (batch,) + input_dim, 0, vocab_size,
                           dtype=jnp.int32)
    # nn.Embedding default init: N(0, 1)
    embedding_weight = jax.random.normal(
        k_emb, (vocab_size, embedding_dim), dtype=jnp.float32)

    out = jax.block_until_ready(same_radical_embedding(x, embedding_weight))
    ref = jax.block_until_ready(_reference(x, embedding_weight))

    assert out.shape == (batch, *input_dim, embedding_dim), out.shape
    assert jnp.allclose(out, ref, rtol=0.0, atol=1e-6), \
        float(jnp.max(jnp.abs(out - ref)))

    print("KERNEL_OK")
</pallas_src>

<mosaic_0001>
module attributes {stable_mosaic.version = 11 : i64} {
  func.func @_onehot_gather_kernel(%arg0: i32, %arg1: memref<32x1xi32, #tpu.memory_space<vmem>>, %arg2: memref<64x128xf32, #tpu.memory_space<vmem>>, %arg3: memref<32x128xf32, #tpu.memory_space<vmem>>) attributes {dimension_semantics = [#tpu.dimension_semantics<parallel>], iteration_bounds = array<i64: 2>, scalar_prefetch = 0 : i64, scratch_operands = 0 : i64, tpu.core_type = #tpu.core_type<tc>, window_params = [{transform_indices = @transform_0, window_bounds = array<i64: 32, 1>}, {pipeline_mode = #tpu.pipeline_mode<synchronous>, transform_indices = @transform_1, window_bounds = array<i64: 64, 128>}, {transform_indices = @transform_2, window_bounds = array<i64: 32, 128>}]} {
    %c0 = arith.constant 0 : index
    %c0_0 = arith.constant 0 : index
    %0 = vector.load %arg1[%c0, %c0_0] : memref<32x1xi32, #tpu.memory_space<vmem>>, vector<32x1xi32>
    %1 = tpu.iota {dimensions = array<i32: 1>} : vector<32x64xi32>
    %2 = vector.broadcast %0 : vector<32x1xi32> to vector<32x64xi32>
    %3 = arith.cmpi eq, %1, %2 : vector<32x64xi32>
    %4 = arith.extui %3 : vector<32x64xi1> to vector<32x64xi32>
    %5 = arith.sitofp %4 : vector<32x64xi32> to vector<32x64xf32>
    %c0_1 = arith.constant 0 : index
    %c0_2 = arith.constant 0 : index
    %6 = vector.load %arg2[%c0_1, %c0_2] : memref<64x128xf32, #tpu.memory_space<vmem>>, vector<64x128xf32>
    %cst = arith.constant dense<0.000000e+00> : vector<32x128xf32>
    %7 = tpu.matmul %5, %6, %cst {dimension_numbers = #tpu.dot_dimension_numbers<[1], [0], [0], [1], [0, 0, 1, 1], [], []>, precision = #tpu.contract_precision<fp32>} : vector<32x64xf32>, vector<64x128xf32>, vector<32x128xf32> -> vector<32x128xf32>
    %c0_3 = arith.constant 0 : index
    %c0_4 = arith.constant 0 : index
    %8 = vector.load %arg3[%c0_3, %c0_4] : memref<32x128xf32, #tpu.memory_space<vmem>>, vector<32x128xf32>
    tpu.vector_store %arg3[%c0_3, %c0_4], %7 {strides = array<i32>} : memref<32x128xf32, #tpu.memory_space<vmem>>, vector<32x128xf32>,
    return
  }
  func.func @transform_0(%arg0: i32) -> (i32, i32) {
    %c0_i32 = arith.constant 0 : i32
    %c0_i32_0 = arith.constant 0 : i32
    return %arg0, %c0_i32 : i32, i32
  }
  func.func @transform_1(%arg0: i32) -> (i32, i32) {
    %c0_i32 = arith.constant 0 : i32
    %c0_i32_0 = arith.constant 0 : i32
    %c0_i32_1 = arith.constant 0 : i32
    return %c0_i32, %c0_i32_0 : i32, i32
  }
  func.func @transform_2(%arg0: i32) -> (i32, i32) {
    %c0_i32 = arith.constant 0 : i32
    %c0_i32_0 = arith.constant 0 : i32
    return %arg0, %c0_i32 : i32, i32
  }
}

</mosaic_0001>

<bundles_post_ra>
// kernel: tpu_custom_call.1
= control target key start
LH: loop header
LB: loop body
LE: loop exit
PB: predicated region body
PF: predicated region fallthrough
CT: control target
= control target key end

     0   :  { %7 = vsyncpa [#allocation3], 0  ;;  %s1681_s0 = inlined_call_operand.vmem [shape: s32[64,1], index: 0, kind: input, shape index: {}]   ;;  %s1682_s1 = inlined_call_operand.vmem [shape: f32[64,128], index: 1, kind: input, shape index: {}]   ;;  %s1683_s2 = inlined_call_operand.hbm [shape: f32[64,128], index: 2, kind: output, shape index: {}]  }
   0x1   :  { %9 = vsyncpa [#allocation3 + $0x1], 0  ;;  %s1420_s9 = smov 0   ;;  %s1422_s10 = smov 0  }
   0x2   :  { %s1424_s11 = smov 0   ;;  %s1426_s12 = smov 0  }
   0x3 LB: > { %s1441_s13 = sadd.s32 4294967295, %s1398_s12   ;;  %s942_s14 = sadd.s32 4294967294, %s1398_s12   ;;  %s1398_s12 = sphi %s1426_s12, %s1689_s12   ;;  %s1394_s11 = sphi %s1424_s11, %s1688_s11   ;;  %s1390_s10 = sphi %s1422_s10, %s1687_s10   ;;  %s1386_s9 = sphi %s1420_s9, %s1686_s9  }
   0x4   : > { %s1445_s15 = sadd.s32 1, %s1398_s12   ;;  %s69_s16 = sadd.s32 1, %s1394_s11 }
   0x5   : > { %s66_s17 = ssub.s32 %s1398_s12, %s1445_s15  ;;  %p79_p0 = scmp.ne.s32.totalorder %s1394_s11, %s1390_s10 }
   0x6   : > { %p67_p1 = scmp.eq.s32.totalorder %s66_s17, 0  ;;  %p80_p2 = scmp.eq.s32.totalorder %s1441_s13, 1 }
   0x7   : > { %p85_p3 = scmp.ne.s32.totalorder %s1390_s10, %s1386_s9  ;;  %p86_p4 = scmp.eq.s32.totalorder %s942_s14, 1 }
   0x8   : > { %s1456_s18 = scalar_select %p67_p1, %s1394_s11, %s69_s16  }
   0x9   : > { %p1458_p5 = por %p80_p2, %p79_p0  ;;  %p1462_p6 = por %p86_p4, %p85_p3 }
   0xa   : > { %p945_p7 = scmp.ge.s32.totalorder %s1398_s12, 1  ;;  %p116_p8 = scmp.lt.s32.totalorder %s1398_s12, 3 }
   0xc   : > { %p117_p9 = pnand %p945_p7, %p116_p8 }
   0xd   : > { %s947_s21 = sshll.u32 (!%p117_p9), %s1441_s13, 2  ;;  %v175_v0 = vld [vmem:[%s1682_s1] sm:$0xff] (!%p117_p9)  ;;  %v176_v1 = vld [vmem:[%s1682_s1 + $0x8] sm:$0xff] (!%p117_p9)  ;;  %v177_v2 = vld [vmem:[%s1682_s1 + $0x10] sm:$0xff] (!%p117_p9)  ;;  %v1400_v3 = vmov (!%p117_p9), 0   ;;  %vm183_vm0 = vcmask (!%p117_p9), 523264  }
   0xe   : > { %120 = sbr.rel (%p117_p9) target bundleno = 434 (0x1b2), region = 28  ;;  %1334 = vset.pattern.permute.xlu0 (!%p117_p9), %v1400_v3  ;;  %p139_p10 = scmp.lt.s32.totalorder (!%p117_p9), %s947_s21, 7  ;;  %1335 = vset.pattern.permute.xlu1 (!%p117_p9), %v1400_v3  ;;  %v197_v4 = vand.u32 (!%p117_p9), 4294901760, %v175_v0  ;;  %v200_v5 = vand.u32 (!%p117_p9), 4294901760, %v176_v1  ;;  %v178_v6 = vld [vmem:[%s1682_s1 + $0x18] sm:$0xff] (!%p117_p9)  ;;  %v203_v7 = vand.u32 (!%p117_p9), 4294901760, %v177_v2 }
   0xf   : > { %v206_v8 = vand.u32 (!%p117_p9), 4294901760, %v178_v6  ;;  %v179_v11 = vld [vmem:[%s1682_s1 + $0x20] sm:$0xff] (!%p117_p9)  ;;  %v180_v12 = vld [vmem:[%s1682_s1 + $0x28] sm:$0xff] (!%p117_p9)  ;;  %v181_v20 = vld [vmem:[%s1682_s1 + $0x30] sm:$0xff] (!%p117_p9)  ;;  %s135_s23 = sand.u32 (!%p117_p9), 1, %s1390_s10   ;;  %s970_s27 = sshll.u32 (!%p117_p9), %s1441_s13, 9 }
  0x10   : > { %v1481_v9 = vpack.c.bf16 (!%p117_p9), %v200_v5, %v197_v4  ;;  %v209_v13 = vand.u32 (!%p117_p9), 4294901760, %v179_v11  ;;  %v212_v14 = vand.u32 (!%p117_p9), 4294901760, %v180_v12  ;;  %v182_v21 = vld [vmem:[%s1682_s1 + $0x38] sm:$0xff] (!%p117_p9)  ;;  %v215_v22 = vand.u32 (!%p117_p9), 4294901760, %v181_v20  ;;  %s946_s24 = sshll.u32 (!%p117_p9), %s135_s23, 5  ;;  %s1640_s3 = scalar_lea.sflag (!%p117_p9), [#allocation3], %s135_s23 }
  0x11   : > { %v1483_v10 = vpack.c.bf16 (!%p117_p9), %v206_v8, %v203_v7  ;;  %v218_v23 = vand.u32 (!%p117_p9), 4294901760, %v182_v21  ;;  %v311_v25 = vsub.f32 (!%p117_p9), %v175_v0, %v197_v4  ;;  %v318_v26 = vsub.f32 (!%p117_p9), %v176_v1, %v200_v5  ;;  %s137_s25 = scalar_lea.vmem (!%p117_p9), [#allocation2], %s946_s24  ;;  %s1402_s4 = smov (!%p117_p9), [#allocation2]  }
  0x12   : > { %1224 = vmatprep.subr.bf16.mxu0 (!%p117_p9), %v1481_v9  ;;  %1176 = vmatprep.subr.bf16.mxu1 (!%p117_p9), %v1481_v9  ;;  %v1500_v18 = vpack.c.bf16 (!%p117_p9), %v212_v14, %v209_v13  ;;  %v325_v32 = vsub.f32 (!%p117_p9), %v177_v2, %v203_v7  ;;  %v332_v33 = vsub.f32 (!%p117_p9), %v178_v6, %v206_v8  ;;  %v149_v5 = vlaneseq (!%p117_p9)  ;;  %s880_s26 = sshll.u32 (!%p117_p9), %s137_s25, 4  ;;  %s1340_s5 = sshll.u32 (!%p117_p9), %s1402_s4, 4  ;;  %s1633_s26 = int_to_ptr.vmem [resolvable:$true] %s880_s26  ;;  %s1341_s5 = int_to_ptr.vmem [resolvable:$false] %s1340_s5 }
  0x13   : > { %1226 = vmatpush3.bf16.msra.mxu0 (!%p117_p9), %v1481_v9  ;;  %1178 = vmatpush3.bf16.msra.mxu1 (!%p117_p9), %v1481_v9  ;;  %v1512_v24 = vpack.c.bf16 (!%p117_p9), %v218_v23, %v215_v22  ;;  %v312_v27 = vand.u32 (!%p117_p9), 4294901760, %v311_v25  ;;  %v319_v28 = vand.u32 (!%p117_p9), 4294901760, %v318_v26  ;;  %v339_v42 = vsub.f32 (!%p117_p9), %v179_v11, %v209_v13  ;;  %s1336_s13 = scalar_lea.vmem (!%p117_p9), %s1633_s26, 512  ;;  %s1342_s6 = scalar_lea.vmem (!%p117_p9), %s1341_s5, 1024 }
  0x14   : > { %1228 = vmatprep.subr.bf16.mxu0 (!%p117_p9), %v1483_v10  ;;  %1180 = vmatprep.subr.bf16.mxu1 (!%p117_p9), %v1483_v10  ;;  %v326_v36 = vand.u32 (!%p117_p9), 4294901760, %v325_v32  ;;  %v333_v37 = vand.u32 (!%p117_p9), 4294901760, %v332_v33  ;;  %v346_v43 = vsub.f32 (!%p117_p9), %v180_v12, %v212_v14  ;;  %v353_v49 = vsub.f32 (!%p117_p9), %v181_v20, %v215_v22  ;;  %p1337_p11 = scmp.ne.s32.totalorder (!%p117_p9), %s1633_s26, %s1336_s13  ;;  %p1343_p0 = scmp.lt.s32.totalorder (!%p117_p9), %s1633_s26, %s1341_s5 }
  0x15   : > { %s1691_s21 = smov (!%p139_p10, %s947_s21), 7  ;;  %v1518_v29 = vpack.c.bf16 %v319_v28, %v312_v27  ;;  %v313_v30 = vsub.f32 %v311_v25, %v312_v27  ;;  %v320_v31 = vsub.f32 %v318_v26, %v319_v28  ;;  %v340_v46 = vand.u32 4294901760, %v339_v42  ;;  %p1344_p1 = scmp.lt.s32.totalorder %s1342_s6, %s1336_s13 }
  0x16   : > { %s948_s30 = sshll.u32 %s1691_s21, 3  ;;  %v1525_v39 = vpack.c.bf16 %v333_v37, %v326_v36  ;;  %v327_v40 = vsub.f32 %v325_v32, %v326_v36  ;;  %v334_v41 = vsub.f32 %v332_v33, %v333_v37  ;;  %v347_v47 = vand.u32 4294901760, %v346_v43  ;;  %p1338_p12 = pnand %p1337_p11, %p1458_p5 }
  0x17   : > { %s142_s14 = scalar_lea.vmem %s1681_s0, %s948_s30  ;;  %1230 = vmatpush3.bf16.msra.mxu0 %v1483_v10  ;;  %1182 = vmatpush3.bf16.msra.mxu1 %v1483_v10  ;;  %v314_v34 = vand.u32 4294901760, %v313_v30  ;;  %v321_v35 = vand.u32 4294901760, %v320_v31  ;;  %v360_v50 = vsub.f32 %v182_v21, %v218_v23  ;;  %v341_v52 = vsub.f32 %v339_v42, %v340_v46  ;;  %s1638_s30 = scalar_lea.hbm %s1683_s2, %s970_s27 }
  0x18   : > { %v145_v15 = vld [vmem:[%s142_s14] sm:$0xff]  ;;  %v147_v16 = vld [vmem:[%s142_s14 + $0x10] sm:$0xff]  ;;  %v146_v17 = vld [vmem:[%s142_s14 + $0x8] sm:$0xff]  ;;  %1232 = vmatprep.subr.bf16.mxu0 %v1500_v18  ;;  %1184 = vmatprep.subr.bf16.mxu1 %v1500_v18  ;;  %v328_v44 = vand.u32 4294901760, %v327_v40  ;;  %v335_v45 = vand.u32 4294901760, %v334_v41  ;;  %v1530_v51 = vpack.c.bf16 %v347_v47, %v340_v46  ;;  %v348_v53 = vsub.f32 %v346_v43, %v347_v47  ;;  %p1339_p13 = pneg %p1338_p12  ;;  %p1345_p2 = por %p1344_p1, %p1343_p0 }
  0x19   : > { %152 = vperm.xlu0 %1334, %v145_v15   ;;  %158 = vperm.xlu1 %1335, %v147_v16   ;;  %v148_v19 = vld [vmem:[%s142_s14 + $0x18] sm:$0xff]  ;;  %v1523_v38 = vpack.c.bf16 %v321_v35, %v314_v34  ;;  %v354_v54 = vand.u32 4294901760, %v353_v49  ;;  %v361_v55 = vand.u32 4294901760, %v360_v50  ;;  %v342_v56 = vand.u32 4294901760, %v341_v52 }
  0x1a   : > { %v1528_v48 = vpack.c.bf16 %v335_v45, %v328_v44  ;;  %v349_v57 = vand.u32 4294901760, %v348_v53  ;;  %v1538_v1 = vpack.c.bf16 %v318_v26, %v311_v25  ;;  %v1540_v2 = vpack.c.bf16 %v332_v33, %v325_v32  ;;  %p1346_p3 = pnand %p1345_p2, %p1339_p13 }
  0x1b   : > { %1234 = vmatpush3.bf16.msra.mxu0 %v1500_v18  ;;  %1186 = vmatpush3.bf16.msra.mxu1 %v1500_v18  ;;  %v1532_v58 = vpack.c.bf16 %v361_v55, %v354_v54  ;;  %v355_v59 = vsub.f32 %v353_v49, %v354_v54  ;;  %v362_v60 = vsub.f32 %v360_v50, %v361_v55  ;;  %v150_v6 = vand.u32 127, %v149_v5 }
  0x1c   : > { %1236 = vmatprep.subr.bf16.mxu0 %v1512_v24  ;;  %1188 = vmatprep.subr.bf16.mxu1 %v1512_v24  ;;  %v1534_v61 = vpack.c.bf16 %v349_v57, %v342_v56  ;;  %v1542_v3 = vpack.c.bf16 %v346_v43, %v339_v42  ;;  %v1544_v4 = vpack.c.bf16 %v360_v50, %v353_v49  ;;  %v1401_v11 = vmov 0.0  }
  0x1d   : > { %155 = vperm.xlu0 %1334, %v146_v17   ;;  %161 = vperm.xlu1 %1335, %v148_v19   ;;  %v356_v62 = vand.u32 4294901760, %v355_v59  ;;  %v363_v63 = vand.u32 4294901760, %v362_v60 }
  0x1f   : > { %1238 = vmatpush3.bf16.msra.mxu0 %v1512_v24  ;;  %1190 = vmatpush3.bf16.msra.mxu1 %v1512_v24  ;;  %v1536_v0 = vpack.c.bf16 %v363_v63, %v356_v62 }
  0x20   : > { %1240 = vmatprep.subr.bf16.mxu0 %v1518_v29  ;;  %1192 = vmatprep.subr.bf16.mxu1 %v1523_v38 }
  0x98   : > { %v153_v7 = vpop.permute.xlu0 %152  ;;  %v159_v8 = vpop.permute.xlu1 %158 }
  0x99   : > { %vm163_vm1 = vcmp.eq.s32.totalorder %v150_v6, %v153_v7  ;;  %vm165_vm2 = vcmp.eq.s32.totalorder %v150_v6, %v159_v8 }
  0x9a   : > { %v1546_v12 = vsel %vm163_vm1, 1.0, %v1401_v11  ;;  %v1548_v13 = vsel %vm165_vm2, 1.0, %v1401_v11 }
  0x9b   : > { %v185_v14 = vsel %vm183_vm0, %v1546_v12, 0  ;;  %v191_v15 = vsel %vm183_vm0, %v1548_v13, 0 }
  0x9c   : > { %v1554_v16 = vsub.f32 %v185_v14, %v185_v14  ;;  %v1556_v17 = vsub.f32 %v191_v15, %v191_v15  ;;  %v156_v19 = vpop.permute.xlu0 %155  ;;  %v162_v20 = vpop.permute.xlu1 %161 }
  0x9d   : > { %vm164_vm3 = vcmp.eq.s32.totalorder %v150_v6, %v156_v19  ;;  %vm166_vm4 = vcmp.eq.s32.totalorder %v150_v6, %v162_v20 }
  0x9e   : > { %v1558_v21 = vsel %vm164_vm3, 1.0, %v1401_v11  ;;  %v1560_v22 = vsel %vm166_vm4, 1.0, %v1401_v11  ;;  %v271_v23 = vand.u32 4294901760, %v1554_v16  ;;  %v291_v25 = vand.u32 4294901760, %v1556_v17 }
  0x9f   : > { %v188_v26 = vsel %vm183_vm0, %v1558_v21, 0  ;;  %v194_v27 = vsel %vm183_vm0, %v1560_v22, 0 }
  0xa0   : > { %v280_v28 = vsub.f32 %v188_v26, %v188_v26  ;;  %v1568_v30 = vsub.f32 %v194_v27, %v194_v27  ;;  %1125 = vmatprep.mubr.f32.mxu0 %v271_v23  ;;  %v272_v31 = vsub.f32 %v1554_v16, %v271_v23  ;;  %v292_v35 = vsub.f32 %v1556_v17, %v291_v25 }
  0xa2   : > { %v273_v32 = vand.u32 4294901760, %v272_v31  ;;  %v281_v33 = vand.u32 4294901760, %v280_v28  ;;  %v301_v34 = vand.u32 4294901760, %v1568_v30  ;;  %v293_v41 = vand.u32 4294901760, %v292_v35 }
  0xa4   : > { %1059 = vmatprep.mubr.f32.mxu1 %v273_v32  ;;  %1126 = vmatmul.mubr.f32.vlgmr.msra.gmra.mrb[0].mxu0 %v281_v33  ;;  %v282_v36 = vsub.f32 %v280_v28, %v281_v33  ;;  %v302_v37 = vsub.f32 %v1568_v30, %v301_v34 }
  0xa5   : > { %1242 = vmatpush3.bf16.msra.mxu0 %v1518_v29  ;;  %1128 = vmatprep.mubr.f32.mxu0 %v291_v25 }
  0xa6   : > { %1244 = vmatprep.subr.bf16.mxu0 %v1525_v39  ;;  %v283_v40 = vand.u32 4294901760, %v282_v36  ;;  %v303_v42 = vand.u32 4294901760, %v302_v37 }
  0xa8   : > { %1060 = vmatmul.mubr.f32.vlgmr.msra.gmra.mrb[0].mxu1 %v283_v40  ;;  %1129 = vmatmul.mubr.f32.gmra.mrb[2].mxu0 %v301_v34 }
  0xa9   : > { %1194 = vmatpush3.bf16.msra.mxu1 %v1523_v38  ;;  %1246 = vmatpush3.bf16.msra.mxu0 %v1525_v39 }
  0xaa   : > { %1147 = vmatprep.mubr.msk.f32.mxu0 %vm183_vm0, %v1546_v12  ;;  %1062 = vmatprep.mubr.f32.mxu1 %v293_v41 }
  0xab   : > { %1196 = vmatprep.subr.bf16.mxu1 %v1528_v48  ;;  %1248 = vmatprep.subr.bf16.mxu0 %v1530_v51 }
  0xac   : > { %1063 = vmatmul.mubr.f32.gmra.mrb[2].mxu1 %v303_v42 }
  0xad   : > { %1198 = vmatpush3.bf16.msra.mxu1 %v1528_v48  ;;  %1250 = vmatpush3.bf16.msra.mxu0 %v1530_v51 }
  0xae   : > { %1081 = vmatprep.mubr.msk.f32.mxu1 %vm183_vm0, %v1546_v12  ;;  %1200 = vmatprep.subr.bf16.mxu1 %v1534_v61 }
  0xaf   : > { %1252 = vmatprep.subr.bf16.mxu0 %v1532_v58 }
  0xb1   : > { %1202 = vmatpush3.bf16.msra.mxu1 %v1534_v61  ;;  %1254 = vmatpush3.bf16.msra.mxu0 %v1532_v58 }
  0xb2   : > { %1204 = vmatprep.subr.bf16.mxu1 %v1536_v0  ;;  %1256 = vmatprep.subr.bf16.mxu0 %v1481_v9 }
  0xb4   : > { %1148 = vmatmul.mubr.msk.f32.vlgmr.msra.gmra.mrb[0].mxu0 %vm183_vm0, %v1558_v21 }
  0xb5   : > { %1206 = vmatpush3.bf16.msra.mxu1 %v1536_v0  ;;  %1150 = vmatprep.mubr.msk.f32.mxu0 %vm183_vm0, %v1548_v13 }
  0xb6   : > { %1258 = vmatpush3.bf16.msra.mxu0 %v1481_v9  ;;  %1208 = vmatprep.subr.bf16.mxu1 %v1538_v1 }
  0xb7   : > { %1260 = vmatprep.subr.bf16.mxu0 %v1483_v10 }
  0xb8   : > { %1082 = vmatmul.mubr.msk.f32.vlgmr.msra.gmra.mrb[0].mxu1 %vm183_vm0, %v1558_v21  ;;  %1151 = vmatmul.mubr.msk.f32.gmra.mrb[2].mxu0 %vm183_vm0, %v1560_v22 }
  0xb9   : > { %1084 = vmatprep.mubr.msk.f32.mxu1 %vm183_vm0, %v1548_v13  ;;  %1210 = vmatpush3.bf16.msra.mxu1 %v1538_v1 }
  0xba   : > { %1262 = vmatpush3.bf16.msra.mxu0 %v1483_v10  ;;  %1169 = vmatprep.mubr.msk.f32.mxu0 %vm183_vm0, %v1546_v12 }
  0xbb   : > { %1212 = vmatprep.subr.bf16.mxu1 %v1540_v2  ;;  %1264 = vmatprep.subr.bf16.mxu0 %v1500_v18 }
  0xbc   : > { %1085 = vmatmul.mubr.msk.f32.gmra.mrb[2].mxu1 %vm183_vm0, %v1560_v22 }
  0xbd   : > { %1214 = vmatpush3.bf16.msra.mxu1 %v1540_v2  ;;  %1103 = vmatprep.mubr.f32.mxu1 %v1554_v16 }
  0xbe   : > { %1266 = vmatpush3.bf16.msra.mxu0 %v1500_v18  ;;  %1216 = vmatprep.subr.bf16.mxu1 %v1542_v3 }
  0xbf   : > { %1268 = vmatprep.subr.bf16.mxu0 %v1512_v24 }
  0xc1   : > { %1218 = vmatpush3.bf16.msra.mxu1 %v1542_v3 }
  0xc2   : > { %1270 = vmatpush3.bf16.msra.mxu0 %v1512_v24  ;;  %1220 = vmatprep.subr.bf16.mxu1 %v1544_v4 }
  0xc5   : > { %1170 = vmatmul.mubr.msk.f32.vlgmr.msra.gmra.mrb[0].mxu0 %vm183_vm0, %v1558_v21  ;;  %1222 = vmatpush3.bf16.msra.mxu1 %v1544_v4 }
  0xc6   : > { %1172 = vmatprep.mubr.msk.f32.mxu0 %vm183_vm0, %v1548_v13 }
  0xc8   : > { %1104 = vmatmul.mubr.f32.vlgmr.msra.gmra.mrb[0].mxu1 %v280_v28 }
  0xc9   : > { %1173 = vmatmul.mubr.msk.f32.gmra.mrb[2].mxu0 %vm183_vm0, %v1560_v22  ;;  %1106 = vmatprep.mubr.f32.mxu1 %v1556_v17 }
  0xcc   : > { %1107 = vmatmul.mubr.f32.gmra.mrb[2].mxu1 %v1568_v30 }
 0x198   : > { %v1171_v9 = vpop.f32.mrb[0].mxu0 }
 0x199   : > { %v840_v10 = vpop.f32.mrb[1].mxu0 }
 0x19b   : > { %v1105_v18 = vpop.f32.mrb[0].mxu1 }
 0x19c   : > { %v1271_v24 = vadd.f32 %v1171_v9, %v1105_v18  ;;  %v1174_v29 = vpop.f32.mrb[2].mxu0  ;;  %v522_v38 = vpop.f32.mrb[1].mxu1 }
 0x19d   : > { %v1272_v39 = vadd.f32 %v840_v10, %v522_v38  ;;  %v852_v43 = vpop.f32.mrb[3].mxu0 }
 0x19e   : > { %863 = vst [vmem:[%s137_s25 + $0x8] sm:$0xff] %v1271_v24 }
 0x19f   : > { %862 = vst [vmem:[%s137_s25] sm:$0xff] %v1272_v39  ;;  %v1108_v44 = vpop.f32.mrb[2].mxu1 }
 0x1a0   : > { %v1273_v45 = vadd.f32 %v1174_v29, %v1108_v44  ;;  %v536_v46 = vpop.f32.mrb[3].mxu1 }
 0x1a1   : > { %v1274_v47 = vadd.f32 %v852_v43, %v536_v46 }
 0x1a2   : > { %865 = vst [vmem:[%s137_s25 + $0x18] sm:$0xff] %v1273_v45 }
 0x1a3   : > { %864 = vst [vmem:[%s137_s25 + $0x10] sm:$0xff] %v1274_v47 }
 0x1a4   : > { %1349 = shalt.err (!%p1346_p3)
}
 0x1a5   : > { %s1350_s7 = scalar_lea.hbm %s1638_s30, 512  ;;  %s1354_s16 = scalar_lea.hbm %s1683_s2, 1024 }
 0x1a6   : > { %p1351_p4 = scmp.ne.s32.totalorder %s1638_s30, %s1350_s7  ;;  %p1355_p9 = scmp.lt.u32.totalorder %s1638_s30, %s1683_s2 }
 0x1a7   : > { %p1356_p10 = scmp.lt.u32.totalorder %s1354_s16, %s1350_s7  ;;  %p1358_p12 = scmp.lt.u32.totalorder %s1350_s7, %s1638_s30 }
 0x1a8   : > { %p1352_p7 = pnand %p1351_p4, %p1458_p5 }
 0x1a9   : > { %p1357_p11 = por %p1356_p10, %p1355_p9 }
 0x1aa   : > { %p1353_p8 = pneg %p1352_p7 }
 0x1ab   : > { %p1359_p13 = por %p1358_p12, %p1357_p11 }
 0x1ad   : > { %p1360_p0 = pnand %p1359_p13, %p1353_p8 }
 0x1af   : > { %1363 = shalt.err (!%p1360_p0)
}
 0x1b0   : > { %s1403_s22 = smov 128   ;;  %s1404_s23 = smov 8  }
 0x1b1   : > { %1291 = dma.vmem_to_hbm [thread:$0]  (%p1458_p5), %s1633_s26, 512, %s1638_s30, %s1640_s3, %s1403_s22, %s1403_s22, %s1404_s23  }
 0x1b2 PF: > { %p1297_p1 = scmp.ge.s32.totalorder %s1398_s12, 2  ;;  %s895_s24 = sand.u32 1, %s1386_s9  }
 0x1b3   : > { %s896_s25 = scalar_lea.sflag [#allocation3], %s895_s24 }
 0x1b4   : > { %p1294_p2 = pnand %p1297_p1, %p1462_p6 }
 0x1b6   : > { %1381 = dma.done.wait (!%p1294_p2), %s896_s25, 512  }
 0x1b7   : > { %1383 = vsyncadd (!%p1294_p2), %s896_s25, 4294966784  ;;  %p12_p3 = scmp.ge.s32.totalorder %s1445_s15, 4   ;;  %s1686_s9 = smov %s1390_s10 }
 0x1b8   : > { %s1687_s10 = smov %s1394_s11  ;;  %s1688_s11 = smov %s1456_s18 }
 0x1b9   : > { %s1689_s12 = smov %s1445_s15  ;;  %14 = sbr.rel (!%p12_p3) target bundleno = 3 (0x3), region = 63 }
 0x1c0   :  { %901 = vsyncpa [#allocation3], 1 }
 0x1c1   :  { %903 = vsyncpa [#allocation3 + $0x1], 1 }

</bundles_post_ra>
